<compile_context>
chip_gen: v5e
topology: v5e:2x2
jax: 0.10.0
libtpu: 0.0.40
codegen_flags: <defaults>
</compile_context>

<pallas_src>
import functools

import jax
import jax.numpy as jnp
from jax import lax
from jax.experimental import pallas as pl
from jax.experimental.pallas import tpu as pltpu

HIDDEN = 64  # mk: Linear(in_channel, 64), mv: Linear(64, 64)


def _vmem_config():
    """Generation-aware (VMEM budget, N-tile cap, vmem_limit_bytes)."""
    try:
        phys = int(pltpu.get_tpu_info().vmem_capacity_bytes)
    except Exception:                   # fall back to the most conservative (v7x/TC) figure
        phys = 64 << 20
    if phys >= (96 << 20):              # v5e / v6e: 128 MiB physical VMEM
        return 72 << 20, 2048, 96 << 20
    return 26 << 20, 512, 32 << 20      # v7x: 64 MiB per TensorCore


def _pick_tiles(B, C, N, budget, n_cap):
    """Choose (batch tile, N tile).

    * >= 2 batch blocks whenever B >= 2 (lets the "parallel" batch axis use both v7x
      TensorCores; no effect on 1-TC chips).
    * N tile is lane-dense (multiple of 128) and <= N, so only the standard ragged last
      tile can occur; for N <= 128 the tile is exactly N (legal: equals the array dim).
    * When over budget shrink b_tile first (n_tile sets the contiguous HBM chunk length and
      lane-dense store width), then n_tile, keeping n_tile >= 512 as long as possible.
    """
    cands = [bt for bt in (8, 4, 2, 1) if B % bt == 0]
    b_tile = next((bt for bt in cands if B // bt >= 2), cands[-1])

    if N <= 128:
        n_tile = N
    else:
        n_tile = max(128, min(n_cap, (N // 128) * 128))

    def need(bt, nt):
        return 4 * (2 * bt * C * nt            # x blocks (double-buffered)
                    + 2 * bt * HIDDEN * nt     # out blocks (double-buffered)
                    + 2 * HIDDEN * nt          # attk / e temporaries (one b live at a time)
                    + bt * HIDDEN * HIDDEN     # folded wv scratch
                    + 2 * bt * HIDDEN          # running max / sum scratch
                    + HIDDEN * C + HIDDEN * HIDDEN)   # resident weights

    while need(b_tile, n_tile) > budget and b_tile > 1:
        b_tile //= 2
    while need(b_tile, n_tile) > budget and n_tile > 512:
        n_tile = max(512, (n_tile // 2) // 128 * 128)
    while need(b_tile, n_tile) > budget and n_tile > 128:
        n_tile = max(128, (n_tile // 2) // 128 * 128)
    return b_tile, n_tile


def _self_attention_kernel(x_ref, wk_ref, wv_ref, o_ref, m_scr, d_scr, wvs_scr,
                           *, b_tile, n_tile, n_valid, ragged):
    # x_ref:  (b_tile, C, n_tile)      wk_ref: (64, C)      wv_ref: (64, 64)
    # o_ref:  (b_tile, 64, n_tile)
    # m_scr / d_scr: (b_tile, 64, 1)   running max / running sum(exp) over all N tiles
    # wvs_scr:       (b_tile, 64, 64)  wv with the per-row 1/denom scale folded in (bf16)
    p = pl.program_id(1)            # pass: 0 = softmax stats, 1 = outputs
    t = pl.program_id(2)            # N-tile index
    nt = pl.num_programs(2)

    wk = wk_ref[...].astype(jnp.bfloat16)          # bf16 MXU operand (perf feedback)

    def attk_tile(b):
        # attk^T tile: (64, n_tile); the softmax axis (torch dim=1 == N) is the lane axis.
        return jnp.dot(wk, x_ref[b].astype(jnp.bfloat16),
                       preferred_element_type=jnp.float32)

    def stats_body(masked):
        # `masked` is a static Python bool: only the ragged last tile pays for the
        # iota / compare / select VPU ops.
        if masked:
            col = t * n_tile + lax.broadcasted_iota(jnp.int32, (HIDDEN, n_tile), 1)
            valid = col < n_valid

        def body(b, carry):
            attk = attk_tile(b)
            if masked:
                tile_max = jnp.max(jnp.where(valid, attk, -jnp.inf), axis=1, keepdims=True)
            else:
                tile_max = jnp.max(attk, axis=1, keepdims=True)
            m_old = m_scr[b]                                   # (64, 1)
            m_new = jnp.maximum(m_old, tile_max)
            e = jnp.exp(attk - m_new)
            if masked:
                e = jnp.where(valid, e, 0.0)
            d_scr[b] = d_scr[b] * jnp.exp(m_old - m_new) + jnp.sum(e, axis=1, keepdims=True)
            m_scr[b] = m_new
            return carry

        lax.fori_loop(0, b_tile, body, 0, unroll=True)

    @pl.when(p == 0)
    def _stats_pass():
        @pl.when(t == 0)
        def _init():
            m_scr[...] = jnp.full(m_scr.shape, -jnp.inf, m_scr.dtype)
            d_scr[...] = jnp.zeros(d_scr.shape, d_scr.dtype)

        if ragged:
            @pl.when(t < nt - 1)
            def _full_tiles():
                stats_body(masked=False)

            @pl.when(t == nt - 1)
            def _last_tile():
                stats_body(masked=True)
        else:
            stats_body(masked=False)

    @pl.when(p == 1)
    def _output_pass():
        @pl.when(t == 0)
        def _fold_scale_into_wv():
            # softmax sums to 1 over N, so attnorm == e / (denom * (1 + 1e-9)).
            # Fold the (64,1) per-row scale into wv's columns once per batch element
            # (an O(64x64) op) instead of scaling the (64, N) tensor.
            wv = wv_ref[...]
            eye = (lax.broadcasted_iota(jnp.int32, (HIDDEN, HIDDEN), 0) ==
                   lax.broadcasted_iota(jnp.int32, (HIDDEN, HIDDEN), 1))

            def fold(b, carry):
                scale = 1.0 / (d_scr[b] * (1.0 + 1e-9))   # exact divide on one (64,1) vreg
                diag = jnp.where(eye, scale, 0.0)          # diag(scale)
                wvs_scr[b] = jnp.dot(wv, diag, preferred_element_type=jnp.float32
                                     ).astype(wvs_scr.dtype)
                return carry

            lax.fori_loop(0, b_tile, fold, 0, unroll=True)

        def body(b, carry):
            e = jnp.exp(attk_tile(b) - m_scr[b])   # only full-width elementwise op (EUP slot)
            # Out-of-bounds columns of the ragged last tile hold garbage, but the matmul is
            # strictly column-local and Pallas' masked store of the partial output block
            # discards those columns.
            o_ref[b] = jnp.dot(wvs_scr[b], e.astype(jnp.bfloat16),
                               preferred_element_type=jnp.float32).astype(o_ref.dtype)
            return carry

        lax.fori_loop(0, b_tile, body, 0, unroll=True)


def self_attention_pallas(x, wk, wv, *, out_dtype=None, max_n_tile=None):
    """x: (B, C, N); wk: (64, C) = mk.weight; wv: (64, 64) = mv.weight. Returns (B, 64, N)."""
    B, C, N = x.shape
    out_dtype = x.dtype if out_dtype is None else out_dtype

    budget, n_cap, vmem_limit = _vmem_config()
    if max_n_tile is not None:
        n_cap = min(n_cap, max_n_tile)
    b_tile, n_tile = _pick_tiles(B, C, N, budget, n_cap)

    nb = B // b_tile
    nt = pl.cdiv(N, n_tile)
    ragged = (N % n_tile) != 0

    kernel = functools.partial(_self_attention_kernel, b_tile=b_tile, n_tile=n_tile,
                               n_valid=N, ragged=ragged)

    # TODO(synk): when b_tile*64*N*2B fits VMEM, cache the pass-0 exp tiles (bf16) plus the
    # per-tile max and skip the pass-1 recompute (saves the second read of x; biggest win
    # when C >= 64).

    return pl.pallas_call(
        kernel,
        out_shape=jax.ShapeDtypeStruct((B, HIDDEN, N), out_dtype),
        grid_spec=pltpu.PrefetchScalarGridSpec(
            num_scalar_prefetch=0,
            grid=(nb, 2, nt),                               # (batch blocks, pass, N tiles)
            in_specs=[
                pl.BlockSpec((b_tile, C, n_tile), lambda b, p, t: (b, 0, t)),
                pl.BlockSpec((HIDDEN, C), lambda b, p, t: (0, 0)),        # resident weight
                pl.BlockSpec((HIDDEN, HIDDEN), lambda b, p, t: (0, 0)),   # resident weight
            ],
            # Pass 0 never writes the output; pin its block index to tile 0 so each output
            # tile is written back to HBM exactly once (lane-dense, during pass 1).  See the
            # header note on the revisit semantics this relies on.
            out_specs=pl.BlockSpec((b_tile, HIDDEN, n_tile),
                                   lambda b, p, t: (b, 0, p * t)),
            scratch_shapes=[
                pltpu.VMEM((b_tile, HIDDEN, 1), jnp.float32),        # running max
                pltpu.VMEM((b_tile, HIDDEN, 1), jnp.float32),        # running sum(exp)
                pltpu.VMEM((b_tile, HIDDEN, HIDDEN), jnp.bfloat16),  # wv @ diag(1/denom)
            ]),
        compiler_params=pltpu.CompilerParams(
            dimension_semantics=("parallel", "arbitrary", "arbitrary"),
            vmem_limit_bytes=vmem_limit),
    )(x, wk, wv)


def self_attention_ref(x, wk, wv):
    """Pure-JAX reference mirroring the PyTorch forward exactly."""
    xt = jnp.transpose(x, (0, 2, 1))                     # (B, N, C)
    attk = jnp.einsum("bnc,hc->bnh", xt, wk)             # (B, N, 64)
    attk = jax.nn.softmax(attk, axis=1)                  # softmax over N
    attnorm = attk / (1e-9 + jnp.sum(attk, axis=1, keepdims=True))
    y = jnp.einsum("bnh,oh->bno", attnorm, wv)           # (B, N, 64)
    return jnp.transpose(y, (0, 2, 1))                   # (B, 64, N)


def _check(B, C, N, key, **kw):
    kx, kk, kv = jax.random.split(key, 3)
    x = jax.random.normal(kx, (B, C, N), dtype=jnp.float32)
    # nn.Linear default init U(-1/sqrt(fan_in), 1/sqrt(fan_in)); weight layout is (out, in).
    wk = jax.random.uniform(kk, (HIDDEN, C), dtype=jnp.float32,
                            minval=-1.0 / (C ** 0.5), maxval=1.0 / (C ** 0.5))
    wv = jax.random.uniform(kv, (HIDDEN, HIDDEN), dtype=jnp.float32,
                            minval=-1.0 / (HIDDEN ** 0.5), maxval=1.0 / (HIDDEN ** 0.5))

    y = jax.block_until_ready(self_attention_pallas(x, wk, wv, **kw))
    y_ref = self_attention_ref(x, wk, wv)
    assert y.shape == (B, HIDDEN, N)
    # Tolerance accounts for the bf16 MXU-operand casts (per perf review); accumulation,
    # softmax stats and the exact-divide 1/denom fold all stay in f32.
    assert jnp.allclose(y, y_ref, atol=2e-3, rtol=2e-2), "mismatch vs reference"


if __name__ == "__main__":
    key = jax.random.PRNGKey(0)
    k0, k1 = jax.random.split(key)

    _check(2, 4, 16, k0)                      # primary shape: batch=2, in_channel=4, N=16
    _check(2, 4, 300, k1, max_n_tile=128)     # multi-tile + ragged-last-tile code path

    print("KERNEL_OK")
</pallas_src>

<mosaic_0001>
module attributes {stable_mosaic.version = 11 : i64} {
  func.func @_self_attention_kernel(%arg0: i32, %arg1: i32, %arg2: i32, %arg3: memref<1x4x16xf32, #tpu.memory_space<vmem>>, %arg4: memref<64x4xf32, #tpu.memory_space<vmem>>, %arg5: memref<64x64xf32, #tpu.memory_space<vmem>>, %arg6: memref<1x64x16xf32, #tpu.memory_space<vmem>>, %arg7: memref<1x64x1xf32, #tpu.memory_space<vmem>>, %arg8: memref<1x64x1xf32, #tpu.memory_space<vmem>>, %arg9: memref<1x64x64xbf16, #tpu.memory_space<vmem>>) attributes {dimension_semantics = [#tpu.dimension_semantics<parallel>, #tpu.dimension_semantics<arbitrary>, #tpu.dimension_semantics<arbitrary>], iteration_bounds = array<i64: 2, 2, 1>, scalar_prefetch = 0 : i64, scratch_operands = 3 : i64, tpu.core_type = #tpu.core_type<tc>, window_params = [{transform_indices = @transform_0, window_bounds = array<i64: 1, 4, 16>}, {pipeline_mode = #tpu.pipeline_mode<synchronous>, transform_indices = @transform_1, window_bounds = array<i64: 64, 4>}, {pipeline_mode = #tpu.pipeline_mode<synchronous>, transform_indices = @transform_2, window_bounds = array<i64: 64, 64>}, {transform_indices = @transform_3, window_bounds = array<i64: 1, 64, 16>}]} {
    %c0 = arith.constant 0 : index
    %c0_0 = arith.constant 0 : index
    %0 = vector.load %arg4[%c0, %c0_0] : memref<64x4xf32, #tpu.memory_space<vmem>>, vector<64x4xf32>
    %1 = arith.truncf %0 : vector<64x4xf32> to vector<64x4xbf16>
    %c0_i32 = arith.constant 0 : i32
    %2 = arith.cmpi eq, %arg1, %c0_i32 : i32
    %3 = arith.extui %2 : i1 to i32
    %c0_i32_1 = arith.constant 0 : i32
    %4 = arith.cmpi ne, %3, %c0_i32_1 : i32
    scf.if %4 {
      %c0_i32_3 = arith.constant 0 : i32
      %8 = arith.cmpi eq, %arg2, %c0_i32_3 : i32
      %9 = arith.extui %8 : i1 to i32
      %c0_i32_4 = arith.constant 0 : i32
      %10 = arith.cmpi ne, %9, %c0_i32_4 : i32
      scf.if %10 {
        %cst_19 = arith.constant 0xFF800000 : f32
        %42 = vector.broadcast %cst_19 : f32 to vector<1x64x1xf32>
        %c0_20 = arith.constant 0 : index
        %c0_21 = arith.constant 0 : index
        %c0_22 = arith.constant 0 : index
        %43 = vector.load %arg7[%c0_20, %c0_21, %c0_22] : memref<1x64x1xf32, #tpu.memory_space<vmem>>, vector<1x64x1xf32>
        tpu.vector_store %arg7[%c0_20, %c0_21, %c0_22], %42 {strides = array<i32>} : memref<1x64x1xf32, #tpu.memory_space<vmem>>, vector<1x64x1xf32>,
        %cst_23 = arith.constant 0.000000e+00 : f32
        %44 = vector.broadcast %cst_23 : f32 to vector<1x64x1xf32>
        %c0_24 = arith.constant 0 : index
        %c0_25 = arith.constant 0 : index
        %c0_26 = arith.constant 0 : index
        %45 = vector.load %arg8[%c0_24, %c0_25, %c0_26] : memref<1x64x1xf32, #tpu.memory_space<vmem>>, vector<1x64x1xf32>
        tpu.vector_store %arg8[%c0_24, %c0_25, %c0_26], %44 {strides = array<i32>} : memref<1x64x1xf32, #tpu.memory_space<vmem>>, vector<1x64x1xf32>,
      } else {
      }
      %c0_i32_5 = arith.constant 0 : i32
      %11 = arith.index_cast %c0_i32_5 : i32 to index
      %c0_6 = arith.constant 0 : index
      %c0_7 = arith.constant 0 : index
      %12 = vector.load %arg3[%11, %c0_6, %c0_7] : memref<1x4x16xf32, #tpu.memory_space<vmem>>, vector<1x4x16xf32>
      %13 = vector.shape_cast %12 : vector<1x4x16xf32> to vector<4x16xf32>
      %14 = arith.truncf %13 : vector<4x16xf32> to vector<4x16xbf16>
      %cst = arith.constant dense<0.000000e+00> : vector<64x16xf32>
      %15 = tpu.matmul %1, %14, %cst {dimension_numbers = #tpu.dot_dimension_numbers<[1], [0], [0], [1], [0, 0, 1, 1], [], []>} : vector<64x4xbf16>, vector<4x16xbf16>, vector<64x16xf32> -> vector<64x16xf32>
      %cst_8 = arith.constant dense<0xFF800000> : vector<64xf32>
      %16 = vector.multi_reduction <maximumf>, %15, %cst_8 [1] : vector<64x16xf32> to vector<64xf32>
      %17 = vector.shape_cast %16 : vector<64xf32> to vector<64x1xf32>
      %18 = arith.index_cast %c0_i32_5 : i32 to index
      %c0_9 = arith.constant 0 : index
      %c0_10 = arith.constant 0 : index
      %19 = vector.load %arg7[%18, %c0_9, %c0_10] : memref<1x64x1xf32, #tpu.memory_space<vmem>>, vector<1x64x1xf32>
      %20 = vector.shape_cast %19 : vector<1x64x1xf32> to vector<64x1xf32>
      %21 = arith.maximumf %20, %17 : vector<64x1xf32>
      %22 = vector.broadcast %21 : vector<64x1xf32> to vector<64x16xf32>
      %23 = arith.subf %15, %22 : vector<64x16xf32>
      %24 = math.exp %23 : vector<64x16xf32>
      %25 = arith.index_cast %c0_i32_5 : i32 to index
      %c0_11 = arith.constant 0 : index
      %c0_12 = arith.constant 0 : index
      %26 = vector.load %arg8[%25, %c0_11, %c0_12] : memref<1x64x1xf32, #tpu.memory_space<vmem>>, vector<1x64x1xf32>
      %27 = vector.shape_cast %26 : vector<1x64x1xf32> to vector<64x1xf32>
      %28 = arith.subf %20, %21 : vector<64x1xf32>
      %29 = math.exp %28 : vector<64x1xf32>
      %30 = arith.mulf %27, %29 : vector<64x1xf32>
      %cst_13 = arith.constant dense<0.000000e+00> : vector<64xf32>
      %31 = vector.multi_reduction <add>, %24, %cst_13 [1] : vector<64x16xf32> to vector<64xf32>
      %32 = vector.shape_cast %31 : vector<64xf32> to vector<64x1xf32>
      %33 = arith.addf %30, %32 : vector<64x1xf32>
      %34 = arith.index_cast %c0_i32_5 : i32 to index
      %c0_14 = arith.constant 0 : index
      %c0_15 = arith.constant 0 : index
      %35 = vector.load %arg8[%34, %c0_14, %c0_15] : memref<1x64x1xf32, #tpu.memory_space<vmem>>, vector<1x64x1xf32>
      %36 = vector.shape_cast %35 : vector<1x64x1xf32> to vector<64x1xf32>
      %37 = vector.shape_cast %33 : vector<64x1xf32> to vector<1x64x1xf32>
      tpu.vector_store %arg8[%34, %c0_14, %c0_15], %37 {strides = array<i32>} : memref<1x64x1xf32, #tpu.memory_space<vmem>>, vector<1x64x1xf32>,
      %38 = arith.index_cast %c0_i32_5 : i32 to index
      %c0_16 = arith.constant 0 : index
      %c0_17 = arith.constant 0 : index
      %39 = vector.load %arg7[%38, %c0_16, %c0_17] : memref<1x64x1xf32, #tpu.memory_space<vmem>>, vector<1x64x1xf32>
      %40 = vector.shape_cast %39 : vector<1x64x1xf32> to vector<64x1xf32>
      %41 = vector.shape_cast %21 : vector<64x1xf32> to vector<1x64x1xf32>
      tpu.vector_store %arg7[%38, %c0_16, %c0_17], %41 {strides = array<i32>} : memref<1x64x1xf32, #tpu.memory_space<vmem>>, vector<1x64x1xf32>,
      %c1_i32_18 = arith.constant 1 : i32
    } else {
    }
    %c1_i32 = arith.constant 1 : i32
    %5 = arith.cmpi eq, %arg1, %c1_i32 : i32
    %6 = arith.extui %5 : i1 to i32
    %c0_i32_2 = arith.constant 0 : i32
    %7 = arith.cmpi ne, %6, %c0_i32_2 : i32
    scf.if %7 {
      %c0_i32_3 = arith.constant 0 : i32
      %8 = arith.cmpi eq, %arg2, %c0_i32_3 : i32
      %9 = arith.extui %8 : i1 to i32
      %c0_i32_4 = arith.constant 0 : i32
      %10 = arith.cmpi ne, %9, %c0_i32_4 : i32
      scf.if %10 {
        %c0_16 = arith.constant 0 : index
        %c0_17 = arith.constant 0 : index
        %31 = vector.load %arg5[%c0_16, %c0_17] : memref<64x64xf32, #tpu.memory_space<vmem>>, vector<64x64xf32>
        %32 = tpu.iota {dimensions = array<i32: 0>} : vector<64x64xi32>
        %33 = tpu.iota {dimensions = array<i32: 1>} : vector<64x64xi32>
        %34 = arith.cmpi eq, %32, %33 : vector<64x64xi32>
        %c0_i32_18 = arith.constant 0 : i32
        %35 = arith.index_cast %c0_i32_18 : i32 to index
        %c0_19 = arith.constant 0 : index
        %c0_20 = arith.constant 0 : index
        %36 = vector.load %arg8[%35, %c0_19, %c0_20] : memref<1x64x1xf32, #tpu.memory_space<vmem>>, vector<1x64x1xf32>
        %37 = vector.shape_cast %36 : vector<1x64x1xf32> to vector<64x1xf32>
        %cst_21 = arith.constant 1.000000e+00 : f32
        %38 = vector.broadcast %cst_21 : f32 to vector<64x1xf32>
        %39 = arith.mulf %37, %38 : vector<64x1xf32>
        %cst_22 = arith.constant 1.000000e+00 : f32
        %40 = vector.broadcast %cst_22 : f32 to vector<64x1xf32>
        %41 = arith.divf %40, %39 : vector<64x1xf32>
        %cst_23 = arith.constant 0.000000e+00 : f32
        %42 = vector.shape_cast %41 : vector<64x1xf32> to vector<64x1xf32>
        %43 = vector.broadcast %42 : vector<64x1xf32> to vector<64x64xf32>
        %44 = vector.broadcast %cst_23 : f32 to vector<64x64xf32>
        %45 = arith.select %34, %43, %44 : vector<64x64xi1>, vector<64x64xf32>
        %cst_24 = arith.constant dense<0.000000e+00> : vector<64x64xf32>
        %46 = tpu.matmul %31, %45, %cst_24 {dimension_numbers = #tpu.dot_dimension_numbers<[1], [0], [0], [1], [0, 0, 1, 1], [], []>} : vector<64x64xf32>, vector<64x64xf32>, vector<64x64xf32> -> vector<64x64xf32>
        %47 = arith.truncf %46 : vector<64x64xf32> to vector<64x64xbf16>
        %48 = arith.index_cast %c0_i32_18 : i32 to index
        %c0_25 = arith.constant 0 : index
        %c0_26 = arith.constant 0 : index
        %49 = vector.load %arg9[%48, %c0_25, %c0_26] : memref<1x64x64xbf16, #tpu.memory_space<vmem>>, vector<1x64x64xbf16>
        %50 = vector.shape_cast %49 : vector<1x64x64xbf16> to vector<64x64xbf16>
        %51 = vector.shape_cast %47 : vector<64x64xbf16> to vector<1x64x64xbf16>
        tpu.vector_store %arg9[%48, %c0_25, %c0_26], %51 {strides = array<i32>} : memref<1x64x64xbf16, #tpu.memory_space<vmem>>, vector<1x64x64xbf16>,
        %c1_i32_27 = arith.constant 1 : i32
      } else {
      }
      %c0_i32_5 = arith.constant 0 : i32
      %11 = arith.index_cast %c0_i32_5 : i32 to index
      %c0_6 = arith.constant 0 : index
      %c0_7 = arith.constant 0 : index
      %12 = vector.load %arg3[%11, %c0_6, %c0_7] : memref<1x4x16xf32, #tpu.memory_space<vmem>>, vector<1x4x16xf32>
      %13 = vector.shape_cast %12 : vector<1x4x16xf32> to vector<4x16xf32>
      %14 = arith.truncf %13 : vector<4x16xf32> to vector<4x16xbf16>
      %cst = arith.constant dense<0.000000e+00> : vector<64x16xf32>
      %15 = tpu.matmul %1, %14, %cst {dimension_numbers = #tpu.dot_dimension_numbers<[1], [0], [0], [1], [0, 0, 1, 1], [], []>} : vector<64x4xbf16>, vector<4x16xbf16>, vector<64x16xf32> -> vector<64x16xf32>
      %16 = arith.index_cast %c0_i32_5 : i32 to index
      %c0_8 = arith.constant 0 : index
      %c0_9 = arith.constant 0 : index
      %17 = vector.load %arg7[%16, %c0_8, %c0_9] : memref<1x64x1xf32, #tpu.memory_space<vmem>>, vector<1x64x1xf32>
      %18 = vector.shape_cast %17 : vector<1x64x1xf32> to vector<64x1xf32>
      %19 = vector.broadcast %18 : vector<64x1xf32> to vector<64x16xf32>
      %20 = arith.subf %15, %19 : vector<64x16xf32>
      %21 = math.exp %20 : vector<64x16xf32>
      %22 = arith.index_cast %c0_i32_5 : i32 to index
      %c0_10 = arith.constant 0 : index
      %c0_11 = arith.constant 0 : index
      %23 = vector.load %arg9[%22, %c0_10, %c0_11] : memref<1x64x64xbf16, #tpu.memory_space<vmem>>, vector<1x64x64xbf16>
      %24 = vector.shape_cast %23 : vector<1x64x64xbf16> to vector<64x64xbf16>
      %25 = arith.truncf %21 : vector<64x16xf32> to vector<64x16xbf16>
      %cst_12 = arith.constant dense<0.000000e+00> : vector<64x16xf32>
      %26 = tpu.matmul %24, %25, %cst_12 {dimension_numbers = #tpu.dot_dimension_numbers<[1], [0], [0], [1], [0, 0, 1, 1], [], []>} : vector<64x64xbf16>, vector<64x16xbf16>, vector<64x16xf32> -> vector<64x16xf32>
      %27 = arith.index_cast %c0_i32_5 : i32 to index
      %c0_13 = arith.constant 0 : index
      %c0_14 = arith.constant 0 : index
      %28 = vector.load %arg6[%27, %c0_13, %c0_14] : memref<1x64x16xf32, #tpu.memory_space<vmem>>, vector<1x64x16xf32>
      %29 = vector.shape_cast %28 : vector<1x64x16xf32> to vector<64x16xf32>
      %30 = vector.shape_cast %26 : vector<64x16xf32> to vector<1x64x16xf32>
      tpu.vector_store %arg6[%27, %c0_13, %c0_14], %30 {strides = array<i32>} : memref<1x64x16xf32, #tpu.memory_space<vmem>>, vector<1x64x16xf32>,
      %c1_i32_15 = arith.constant 1 : i32
    } else {
    }
    return
  }
  func.func @transform_0(%arg0: i32, %arg1: i32, %arg2: i32) -> (i32, i32, i32) {
    %c0_i32 = arith.constant 0 : i32
    %c0_i32_0 = arith.constant 0 : i32
    return %arg0, %c0_i32, %arg2 : i32, i32, i32
  }
  func.func @transform_1(%arg0: i32, %arg1: i32, %arg2: i32) -> (i32, i32) {
    %c0_i32 = arith.constant 0 : i32
    %c0_i32_0 = arith.constant 0 : i32
    %c0_i32_1 = arith.constant 0 : i32
    return %c0_i32, %c0_i32_0 : i32, i32
  }
  func.func @transform_2(%arg0: i32, %arg1: i32, %arg2: i32) -> (i32, i32) {
    %c0_i32 = arith.constant 0 : i32
    %c0_i32_0 = arith.constant 0 : i32
    %c0_i32_1 = arith.constant 0 : i32
    return %c0_i32, %c0_i32_0 : i32, i32
  }
  func.func @transform_3(%arg0: i32, %arg1: i32, %arg2: i32) -> (i32, i32, i32) {
    %0 = arith.muli %arg1, %arg2 : i32
    %c0_i32 = arith.constant 0 : i32
    %c0_i32_0 = arith.constant 0 : i32
    return %arg0, %c0_i32, %0 : i32, i32, i32
  }
}

</mosaic_0001>

<bundles_post_ra>
// kernel: tpu_custom_call.1
= control target key start
LH: loop header
LB: loop body
LE: loop exit
PB: predicated region body
PF: predicated region fallthrough
CT: control target
= control target key end

     0   :  { %8 = vsyncpa [#allocation6], 0  ;;  %s1969_s0 = inlined_call_operand.hbm [shape: f32[2,4,16], index: 0, kind: input, shape index: {}]   ;;  %s1970_s1 = inlined_call_operand.vmem [shape: f32[64,4], index: 1, kind: input, shape index: {}]   ;;  %s1971_s2 = inlined_call_operand.vmem [shape: f32[64,64], index: 2, kind: input, shape index: {}]   ;;  %s1972_s3 = inlined_call_operand.vmem [shape: f32[2,64,16], index: 3, kind: output, shape index: {}]  }
   0x1   :  { %10 = vsyncpa [#allocation6 + $0x1], 0  ;;  %s1446_s12 = smov 0   ;;  %s1448_s13 = smov 0  }
   0x2   :  { %s1450_s14 = smov 0   ;;  %s1452_s15 = smov 0  }
   0x3   :  { %s1454_s16 = smov 0   ;;  %s1456_s17 = smov 0  }
   0x4   :  { %s1458_s18 = smov 0   ;;  %s1460_s19 = smov 0  }
   0x5 LB: > { %s1101_s20 = sadd.s32 4294967295, %s1420_s19   ;;  %s31_s21 = sadd.s32 1, %s1412_s17  ;;  %s1420_s19 = sphi %s1460_s19, %s16_s19   ;;  %s1416_s18 = sphi %s1458_s18, %s1999_s18   ;;  %s1412_s17 = sphi %s1456_s17, %s1998_s17   ;;  %s1408_s16 = sphi %s1454_s16, %s1997_s16   ;;  %s1404_s15 = sphi %s1452_s15, %s1996_s15   ;;  %s1400_s14 = sphi %s1450_s14, %s1995_s14   ;;  %s1396_s13 = sphi %s1448_s13, %s1994_s13   ;;  %s1392_s12 = sphi %s1446_s12, %s1993_s12  }
   0x6   : > { %p33_p0 = scmp.ge.s32.totalorder %s31_s21, 2  ;;  %s35_s22 = sadd.s32 1, %s1416_s18 }
   0x7   : > { %s44_s23 = sadd.s32 1, %s1400_s14  ;;  %p51_p1 = scmp.ne.s32.totalorder %s1400_s14, %s1396_s13 }
   0x8   : > { %s2001_s21 = smov (%p33_p0, %s31_s21), 0  ;;  %s2003_s22 = smov (!%p33_p0, %s35_s22), %s1416_s18 }
   0x9   : > { %p52_p2 = scmp.eq.s32.totalorder %s1420_s19, 0  ;;  %p57_p3 = scmp.ne.s32.totalorder %s1396_s13, %s1392_s12 }
   0xa   : > { %p37_p4 = scmp.ge.s32.totalorder %s2003_s22, 2  ;;  %p58_p5 = scmp.eq.s32.totalorder %s1101_s20, 0 }
   0xb   : > { %p1495_p6 = por %p52_p2, %p51_p1  ;;  %p1185_p8 = scmp.lt.s32.totalorder %s1420_s19, 4 }
   0xc   : > { %s2005_s22 = smov (%p37_p4, %s2003_s22), 0  ;;  %p1501_p7 = por %p58_p5, %p57_p3 }
   0xd   : > { %s39_s26 = ssub.s32 %s1416_s18, %s2005_s22  ;;  %s159_s27 = sand.u32 1, %s1400_s14  }
   0xe   : > { %p42_p9 = scmp.eq.s32.totalorder %s39_s26, 0  ;;  %s1105_s28 = sshll.u32 %s159_s27, 2 }
   0xf   : > { %s1106_s29 = sshll.u32 %s1416_s18, 2  ;;  %s163_s8 = scalar_lea.vmem [#allocation5], %s1105_s28 }
  0x10   : > { %s1511_s30 = scalar_select %p42_p9, %s1400_s14, %s44_s23  }
  0x11   : > { %s168_s6 = scalar_lea.hbm %s1969_s0, %s1106_s29  ;;  %s172_s9 = sshll.u32 %s163_s8, 4  ;;  %s173_s9 = int_to_ptr.vmem [resolvable:$true] %s172_s9 }
  0x12   : > { %s170_s7 = sshll.u32 %s168_s6, 4  ;;  %p1182_p10 = pnand %p1185_p8, %p1495_p6  ;;  %s171_s7 = int_to_ptr.hbm [resolvable:$true] %s170_s7 }
  0x13   : > { %p1107_p11 = scmp.ge.s32.totalorder %s1420_s19, 1  ;;  %p177_p12 = scmp.lt.s32.totalorder %s1420_s19, 5 }
  0x14   : > { %s160_s10 = scalar_lea.sflag [#allocation6], %s159_s27 }
  0x15   : > { %1184 = dma.hbm_to_vmem [thread:$0]  (!%p1182_p10), %s171_s7, 64, %s173_s9, %s160_s10  }
  0x16   : > { %p178_p13 = pnand %p1107_p11, %p177_p12 }
  0x17   : > { %s183_s11 = sand.u32 (!%p178_p13), 1, %s1396_s13  }
  0x18   : > { %181 = sbr.rel (%p178_p13) target bundleno = 1045 (0x415), region = 32  ;;  %s1523_s12 = sshll.u32 (!%p178_p13), %s183_s11, 2 }
  0x19   : > { %s184_s20 = scalar_lea.sflag (!%p178_p13), [#allocation6], %s183_s11  ;;  %s187_s23 = scalar_lea.vmem (!%p178_p13), [#allocation5], %s1523_s12 }
  0x1d   : > { %1387 = dma.done.wait (%p1501_p7), %s184_s20, 64  }
  0x1e   : > { %1389 = vsyncadd (%p1501_p7), %s184_s20, 4294967232  ;;  %p216_p0 = scmp.lt.s32.totalorder %s1408_s16, 1  ;;  %v226_v0 = vld [vmem:[%s1970_s1] sm:$0xff]  ;;  %v227_v1 = vld [vmem:[%s1970_s1 + $0x8] sm:$0xff]  ;;  %p1111_p1 = scmp.ne.s32.totalorder %s1404_s15, 0 }
  0x1f   : > { %v228_v2 = vld [vmem:[%s1970_s1 + $0x10] sm:$0xff]  ;;  %v229_v3 = vld [vmem:[%s1970_s1 + $0x18] sm:$0xff]  ;;  %v230_v4 = vld [vmem:[%s1970_s1 + $0x20] sm:$0xff]  ;;  %v1555_v6 = vpack.c.bf16 %v227_v1, %v226_v0 }
  0x20   : > { %s2007_s16 = smov (!%p216_p0, %s1408_s16), 1  ;;  %v231_v5 = vld [vmem:[%s1970_s1 + $0x28] sm:$0xff]  ;;  %v232_v7 = vld [vmem:[%s1970_s1 + $0x30] sm:$0xff]  ;;  %v233_v8 = vld [vmem:[%s1970_s1 + $0x38] sm:$0xff]  ;;  %v1563_v9 = vpack.c.bf16 %v229_v3, %v228_v2  ;;  %241 = sbr.rel (%p1111_p1) target bundleno = 567 (0x237), region = 40 }
  0x21   : > { %s1159_s24 = sshll.u32 %s2007_s16, 6  ;;  %v1565_v10 = vpack.c.bf16 %v231_v5, %v230_v4  ;;  %v1567_v11 = vpack.c.bf16 %v233_v8, %v232_v7 }
  0x22   : > { %s1535_s28 = scalar_lea.vmem %s1972_s3, %s1159_s24 }
  0x25   : > { %v263_v12 = vld [vmem:[%s187_s23] sm:$0xf]  ;;  %vm278_vm0 = vcmask 1041408   ;;  %vm265_vm1 = vcmask 31744   ;;  %vm311_vm2 = vcmask 130048   ;;  %vm246_vm3 = vcmask 7168  }
  0x26   : > { %v264_v13 = vpack.c.bf16 %v263_v12, %v263_v12  ;;  %v1422_v31 = vmov -inf   ;;  %v1423_v32 = vmov 0   ;;  %v1424_v33 = vmov 0.0  }
  0x27   : > { %249 = vst.msk [vmem:[#allocation2 + $0x10] sm:$0xff] %vm246_vm3, %v1422_v31  ;;  %1255 = vset.pattern.permute.xlu1 %v1423_v32  ;;  %1254 = vset.pattern.permute.xlu2 %v1423_v32 }
  0x28   : > { %v280_v14 = vsel %vm278_vm0, %v264_v13, 0  ;;  %247 = vst.msk [vmem:[#allocation2] sm:$0xff] %vm246_vm3, %v1422_v31  ;;  %1256 = vset.pattern.permute.xlu0 %v1423_v32 }
  0x29   : > { %289 = vmatpush.bf16.msra.mxu0 %v280_v14  ;;  %1164 = vmatpush.bf16.msra.mxu1 %v280_v14  ;;  %248 = vst.msk [vmem:[#allocation2 + $0x8] sm:$0xff] %vm246_vm3, %v1422_v31 }
  0x2a   : > { %1165 = vmatpush.bf16.msra.mxu2 %v280_v14  ;;  %1166 = vmatpush.bf16.msra.mxu3 %v280_v14  ;;  %250 = vst.msk [vmem:[#allocation2 + $0x18] sm:$0xff] %vm246_vm3, %v1422_v31 }
  0x2b   : > { %251 = vst.msk [vmem:[#allocation2 + $0x20] sm:$0xff] %vm246_vm3, %v1422_v31 }
  0x2c   : > { %1112 = vmatmul.msk.bf16.vlgmr.msra.gmra.mxu0 %vm265_vm1, %v1555_v6  ;;  %1113 = vmatmul.msk.bf16.vlgmr.msra.gmra.mxu1 %vm265_vm1, %v1563_v9  ;;  %252 = vst.msk [vmem:[#allocation2 + $0x28] sm:$0xff] %vm246_vm3, %v1422_v31 }
  0x2d   : > { %1114 = vmatmul.msk.bf16.vlgmr.msra.gmra.mxu2 %vm265_vm1, %v1565_v10  ;;  %1115 = vmatmul.msk.bf16.vlgmr.msra.gmra.mxu3 %vm265_vm1, %v1567_v11  ;;  %253 = vst.msk [vmem:[#allocation2 + $0x30] sm:$0xff] %vm246_vm3, %v1422_v31 }
  0x2e   : > { %254 = vst.msk [vmem:[#allocation2 + $0x38] sm:$0xff] %vm246_vm3, %v1422_v31  ;;  %v1624_v34 = vld [vmem:[#allocation2 + $0x10] sm:$0xff] }
  0x2f   : > { %255 = vst.msk [vmem:[#allocation3] sm:$0xff] %vm246_vm3, %v1424_v33  ;;  %v1626_v35 = vld [vmem:[#allocation2] sm:$0xff] }
  0x30   : > { %256 = vst.msk [vmem:[#allocation3 + $0x8] sm:$0xff] %vm246_vm3, %v1424_v33  ;;  %v1676_v56 = vld [vmem:[#allocation2 + $0x8] sm:$0xff] }
  0x31   : > { %257 = vst.msk [vmem:[#allocation3 + $0x10] sm:$0xff] %vm246_vm3, %v1424_v33  ;;  %v1646_v43 = vld [vmem:[#allocation2 + $0x18] sm:$0xff] }
  0x32   : > { %258 = vst.msk [vmem:[#allocation3 + $0x18] sm:$0xff] %vm246_vm3, %v1424_v33  ;;  %v1644_v42 = vld [vmem:[#allocation2 + $0x20] sm:$0xff] }
  0x33   : > { %259 = vst.msk [vmem:[#allocation3 + $0x20] sm:$0xff] %vm246_vm3, %v1424_v33  ;;  %v1672_v54 = vld [vmem:[#allocation2 + $0x28] sm:$0xff] }
  0x34   : > { %260 = vst.msk [vmem:[#allocation3 + $0x28] sm:$0xff] %vm246_vm3, %v1424_v33  ;;  %v1648_v44 = vld [vmem:[#allocation2 + $0x30] sm:$0xff] }
  0x35   : > { %261 = vst.msk [vmem:[#allocation3 + $0x30] sm:$0xff] %vm246_vm3, %v1424_v33  ;;  %v1674_v55 = vld [vmem:[#allocation2 + $0x38] sm:$0xff] }
  0x36   : > { %262 = vst.msk [vmem:[#allocation3 + $0x38] sm:$0xff] %vm246_vm3, %v1424_v33 }
  0xa9   : > { %v1576_v15 = vpop.f32.mrf.mxu0  ;;  %v1578_v16 = vpop.f32.mrf.mxu1 }
  0xaa   : > { %v318_v17 = vsel %vm311_vm2, %v1578_v16, -inf  ;;  %v312_v18 = vsel %vm311_vm2, %v1576_v15, -inf }
  0xab   : > { %319 = vmax.xlane.f32.xlu1 %v318_v17  ;;  %313 = vmax.xlane.f32.xlu0 %v312_v18 }
  0xb0   : > { %v1584_v19 = vpop.f32.mrf.mxu2  ;;  %v1586_v20 = vpop.f32.mrf.mxu3 }
  0xb1   : > { %v324_v21 = vsel %vm311_vm2, %v1584_v19, -inf  ;;  %v1590_v22 = vpop.f32.mrf.mxu1  ;;  %v330_v23 = vsel %vm311_vm2, %v1586_v20, -inf  ;;  %v1596_v25 = vpop.f32.mrf.mxu0 }
  0xb2   : > { %325 = vmax.xlane.f32.xlu2 %v324_v21  ;;  %v321_v24 = vsel %vm311_vm2, %v1590_v22, -inf  ;;  %v315_v30 = vsel %vm311_vm2, %v1596_v25, -inf }
  0xb3   : > { %322 = vmax.xlane.f32.xlu1 %v321_v24  ;;  %331 = vmax.xlane.f32.xlu0 %v330_v23 }
  0xb8   : > { %v1598_v26 = vpop.f32.mrf.mxu2  ;;  %v1600_v27 = vpop.f32.mrf.mxu3 }
  0xb9   : > { %v327_v28 = vsel %vm311_vm2, %v1598_v26, -inf  ;;  %v333_v29 = vsel %vm311_vm2, %v1600_v27, -inf }
  0xba   : > { %328 = vmax.xlane.f32.xlu2 %v327_v28 }
  0xbb   : > { %334 = vmax.xlane.f32.xlu1 %v333_v29  ;;  %316 = vmax.xlane.f32.xlu0 %v315_v30 }
 0x11e   : > { %v320_v36 = vpop.xlane.xlu1 %319  ;;  %v314_v37 = vpop.xlane.xlu0 %313 }
 0x11f   : > { %v1629_v38 = vmax.f32 %v1624_v34, %v320_v36  ;;  %v1632_v39 = vmax.f32 %v1626_v35, %v314_v37 }
 0x121   : > { %v426_v40 = vsub.f32 %v1624_v34, %v1629_v38  ;;  %499 = vst.msk [vmem:[#allocation2 + $0x10] sm:$0xff] %vm246_vm3, %v1629_v38  ;;  %v424_v41 = vsub.f32 %v1626_v35, %v1632_v39  ;;  %364 = vperm.xlu1 %1255, %v1629_v38   ;;  %354 = vperm.xlu2 %1254, %v1632_v39  }
 0x122   : > { %497 = vst.msk [vmem:[#allocation2] sm:$0xff] %vm246_vm3, %v1632_v39 }
 0x123   : > { %v436_v35 = vmul.f32 1.442695, %v426_v40 }
 0x125   : > { %v326_v45 = vpop.xlane.xlu2 %325 }
 0x126   : > { %v1651_v46 = vmax.f32 %v1644_v42, %v326_v45  ;;  %v323_v47 = vpop.xlane.xlu1 %322  ;;  %v332_v48 = vpop.xlane.xlu0 %331 }
 0x127   : > { %v1654_v49 = vmax.f32 %v1646_v43, %v323_v47  ;;  %v1657_v50 = vmax.f32 %v1648_v44, %v332_v48 }
 0x128   : > { %v428_v51 = vsub.f32 %v1644_v42, %v1651_v46  ;;  %501 = vst.msk [vmem:[#allocation2 + $0x20] sm:$0xff] %vm246_vm3, %v1651_v46 }
 0x129   : > { %v427_v52 = vsub.f32 %v1646_v43, %v1654_v49  ;;  %500 = vst.msk [vmem:[#allocation2 + $0x18] sm:$0xff] %vm246_vm3, %v1654_v49  ;;  %v430_v53 = vsub.f32 %v1648_v44, %v1657_v50  ;;  %374 = vperm.xlu2 %1254, %v1651_v46  }
 0x12a   : > { %503 = vst.msk [vmem:[#allocation2 + $0x30] sm:$0xff] %vm246_vm3, %v1657_v50 }
 0x12b   : > { %v438_v38 = vmul.f32 1.442695, %v427_v52 }
 0x12d   : > { %v329_v57 = vpop.xlane.xlu2 %328 }
 0x12e   : > { %v1679_v58 = vmax.f32 %v1672_v54, %v329_v57  ;;  %v335_v59 = vpop.xlane.xlu1 %334  ;;  %v317_v60 = vpop.xlane.xlu0 %316 }
 0x12f   : > { %v1682_v61 = vmax.f32 %v1674_v55, %v335_v59  ;;  %v1685_v62 = vmax.f32 %v1676_v56, %v317_v60 }
 0x130   : > { %v429_v63 = vsub.f32 %v1672_v54, %v1679_v58  ;;  %502 = vst.msk [vmem:[#allocation2 + $0x28] sm:$0xff] %vm246_vm3, %v1679_v58  ;;  %379 = vperm.xlu1 %1255, %v1679_v58   ;;  %v421_v54 = vld [vmem:[#allocation3 + $0x28] sm:$0xff] }
 0x131   : > { %v431_v0 = vsub.f32 %v1674_v55, %v1682_v61  ;;  %504 = vst.msk [vmem:[#allocation2 + $0x38] sm:$0xff] %vm246_vm3, %v1682_v61  ;;  %v425_v1 = vsub.f32 %v1676_v56, %v1685_v62  ;;  %359 = vperm.xlu0 %1256, %v1685_v62   ;;  %369 = vperm.xlu2 %1254, %v1654_v49   ;;  %v444_v55 = vmul.f32 1.442695, %v430_v53  ;;  %v423_v49 = vld [vmem:[#allocation3 + $0x38] sm:$0xff] }
 0x132   : > { %498 = vst.msk [vmem:[#allocation2 + $0x8] sm:$0xff] %vm246_vm3, %v1685_v62 }
 0x133   : > { %v446_v34 = vmul.f32 1.442695, %v431_v0 }
 0x138   : > { %389 = vperm.xlu1 %1255, %v1682_v61   ;;  %v419_v61 = vld [vmem:[#allocation3 + $0x18] sm:$0xff] }
 0x139   : > { %384 = vperm.xlu2 %1254, %v1657_v50   ;;  %v422_v50 = vld [vmem:[#allocation3 + $0x30] sm:$0xff] }
 0x17b   : > { %v355_v2 = vpop.permute.xlu2 %354 }
 0x17c   : > { %v392_v3 = vsub.f32 %v1576_v15, %v355_v2 }
 0x17e   : > { %v400_v4 = vmul.f32 1.442695, %v392_v3 }
 0x180   : > { %1257 = vpow2.f32 %v400_v4 }
 0x183   : > { %v375_v5 = vpop.permute.xlu2 %374 }
 0x184   : > { %v396_v7 = vsub.f32 %v1584_v19, %v375_v5 }
 0x186   : > { %v1258_v8 = vpop.eup %1257  ;;  %v408_v12 = vmul.f32 1.442695, %v396_v7  ;;  %v432_v7 = vmul.f32 1.442695, %v424_v41  ;;  %v418_v41 = vld [vmem:[#allocation3 + $0x10] sm:$0xff] }
 0x187   : > { %v456_v13 = vsel %vm311_vm2, %v1258_v8, 0.0  ;;  %v440_v8 = vmul.f32 1.442695, %v428_v51  ;;  %v442_v51 = vmul.f32 1.442695, %v429_v63  ;;  %v417_v63 = vld [vmem:[#allocation3 + $0x8] sm:$0xff] }
 0x188   : > { %1259 = vpow2.f32 %v408_v12  ;;  %457 = vadd.xlane.f32.xlu0 %v456_v13  ;;  %v416_v13 = vld [vmem:[#allocation3] sm:$0xff] }
 0x18b   : > { %v370_v19 = vpop.permute.xlu2 %369 }
 0x18c   : > { %v395_v33 = vsub.f32 %v1590_v22, %v370_v19 }
 0x18e   : > { %v1260_v14 = vpop.eup %1259 }
 0x18f   : > { %v468_v17 = vsel %vm311_vm2, %v1260_v14, 0.0 }
 0x190   : > { %469 = vadd.xlane.f32.xlu0 %v468_v17 }
 0x193   : > { %v365_v18 = vpop.permute.xlu1 %364  ;;  %v385_v45 = vpop.permute.xlu2 %384 }
 0x194   : > { %v394_v21 = vsub.f32 %v1578_v16, %v365_v18  ;;  %v406_v16 = vmul.f32 1.442695, %v395_v33 }
 0x196   : > { %v404_v23 = vmul.f32 1.442695, %v394_v21 }
 0x198   : > { %1261 = vpow2.f32 %v404_v23  ;;  %v420_v23 = vld [vmem:[#allocation3 + $0x20] sm:$0xff] }
 0x19e   : > { %v1262_v15 = vpop.eup %1261 }
 0x19f   : > { %v462_v24 = vsel %vm311_vm2, %v1262_v15, 0.0 }
 0x1a0   : > { %463 = vadd.xlane.f32.xlu1 %v462_v24 }
 0x1a2   : > { %v380_v28 = vpop.permute.xlu1 %379 }
 0x1a3   : > { %v397_v29 = vsub.f32 %v1598_v26, %v380_v28  ;;  %v360_v30 = vpop.permute.xlu0 %359  ;;  %v398_v26 = vsub.f32 %v1586_v20, %v385_v45 }
 0x1a4   : > { %v393_v31 = vsub.f32 %v1596_v25, %v360_v30 }
 0x1a5   : > { %v410_v32 = vmul.f32 1.442695, %v397_v29  ;;  %v412_v25 = vmul.f32 1.442695, %v398_v26  ;;  %v434_v29 = vmul.f32 1.442695, %v425_v1 }
 0x1a6   : > { %v402_v36 = vmul.f32 1.442695, %v393_v31 }
 0x1a7   : > { %1263 = vpow2.f32 %v410_v32 }
 0x1a8   : > { %1265 = vpow2.f32 %v402_v36 }
 0x1a9   : > { %1267 = vpow2.f32 %v406_v16 }
 0x1aa   : > { %v390_v37 = vpop.permute.xlu1 %389 }
 0x1ab   : > { %v399_v47 = vsub.f32 %v1600_v27, %v390_v37 }
 0x1ad   : > { %v1264_v48 = vpop.eup %1263  ;;  %v414_v57 = vmul.f32 1.442695, %v399_v47 }
 0x1ae   : > { %v1266_v59 = vpop.eup %1265  ;;  %v471_v60 = vsel %vm311_vm2, %v1264_v48, 0.0 }
 0x1af   : > { %1269 = vpow2.f32 %v414_v57  ;;  %472 = vadd.xlane.f32.xlu1 %v471_v60  ;;  %v459_v22 = vsel %vm311_vm2, %v1266_v59, 0.0  ;;  %v1268_v2 = vpop.eup %1267 }
 0x1b0   : > { %460 = vadd.xlane.f32.xlu2 %v459_v22  ;;  %1271 = vpow2.f32 %v412_v25  ;;  %v465_v27 = vsel %vm311_vm2, %v1268_v2, 0.0 }
 0x1b1   : > { %1273 = vpow2.f32 %v432_v7 }
 0x1b2   : > { %1275 = vpow2.f32 %v440_v8 }
 0x1b3   : > { %1277 = vpow2.f32 %v436_v35 }
 0x1b4   : > { %1279 = vpow2.f32 %v442_v51 }
 0x1b5   : > { %v1270_v3 = vpop.eup %1269  ;;  %1281 = vpow2.f32 %v434_v29 }
 0x1b6   : > { %v477_v4 = vsel %vm311_vm2, %v1270_v3, 0.0  ;;  %v1272_v5 = vpop.eup %1271  ;;  %1283 = vpow2.f32 %v446_v34 }
 0x1b7   : > { %478 = vadd.xlane.f32.xlu0 %v477_v4  ;;  %v474_v20 = vsel %vm311_vm2, %v1272_v5, 0.0  ;;  %v1274_v12 = vpop.eup %1273  ;;  %1285 = vpow2.f32 %v438_v38 }
 0x1b8   : > { %466 = vadd.xlane.f32.xlu2 %v465_v27  ;;  %v448_v14 = vmul.f32 %v1274_v12, %v416_v13  ;;  %v1276_v21 = vpop.eup %1275  ;;  %1287 = vpow2.f32 %v444_v55 }
 0x1b9   : > { %v452_v15 = vmul.f32 %v1276_v21, %v420_v23  ;;  %v1278_v39 = vpop.eup %1277 }
 0x1ba   : > { %v450_v42 = vmul.f32 %v1278_v39, %v418_v41  ;;  %v1280_v40 = vpop.eup %1279 }
 0x1bb   : > { %v1282_v58 = vpop.eup %1281  ;;  %v453_v56 = vmul.f32 %v1280_v40, %v421_v54 }
 0x1bc   : > { %v449_v1 = vmul.f32 %v1282_v58, %v417_v63  ;;  %v1284_v43 = vpop.eup %1283 }
 0x1bd   : > { %v1286_v52 = vpop.eup %1285  ;;  %v455_v0 = vmul.f32 %v1284_v43, %v423_v49 }
 0x1be   : > { %v451_v36 = vmul.f32 %v1286_v52, %v419_v61  ;;  %v1288_v44 = vpop.eup %1287 }
 0x1bf   : > { %v454_v53 = vmul.f32 %v1288_v44, %v422_v50 }
 0x1c0   : > { %475 = vadd.xlane.f32.xlu2 %v474_v20 }
 0x1fb   : > { %v458_v17 = vpop.xlane.xlu0 %457 }
 0x1fc   : > { %v480_v18 = vadd.f32 %v458_v17, %v448_v14 }
 0x1fe   : > { %489 = vst.msk [vmem:[#allocation3] sm:$0xff] %vm246_vm3, %v480_v18 }
 0x203   : > { %v470_v24 = vpop.xlane.xlu0 %469 }
 0x204   : > { %v484_v19 = vadd.f32 %v470_v24, %v452_v15 }
 0x206   : > { %493 = vst.msk [vmem:[#allocation3 + $0x20] sm:$0xff] %vm246_vm3, %v484_v19 }
 0x213   : > { %v464_v46 = vpop.xlane.xlu1 %463 }
 0x214   : > { %v482_v28 = vadd.f32 %v464_v46, %v450_v42 }
 0x216   : > { %491 = vst.msk [vmem:[#allocation3 + $0x10] sm:$0xff] %vm246_vm3, %v482_v28 }
 0x222   : > { %v473_v62 = vpop.xlane.xlu1 %472 }
 0x223   : > { %v485_v30 = vadd.f32 %v473_v62, %v453_v56  ;;  %v461_v31 = vpop.xlane.xlu2 %460 }
 0x224   : > { %v481_v32 = vadd.f32 %v461_v31, %v449_v1 }
 0x225   : > { %494 = vst.msk [vmem:[#allocation3 + $0x28] sm:$0xff] %vm246_vm3, %v485_v30 }
 0x226   : > { %490 = vst.msk [vmem:[#allocation3 + $0x8] sm:$0xff] %vm246_vm3, %v481_v32 }
 0x22a   : > { %v479_v33 = vpop.xlane.xlu0 %478 }
 0x22b   : > { %v487_v16 = vadd.f32 %v479_v33, %v455_v0  ;;  %v467_v37 = vpop.xlane.xlu2 %466 }
 0x22c   : > { %v483_v45 = vadd.f32 %v467_v37, %v451_v36 }
 0x22d   : > { %496 = vst.msk [vmem:[#allocation3 + $0x38] sm:$0xff] %vm246_vm3, %v487_v16 }
 0x22e   : > { %492 = vst.msk [vmem:[#allocation3 + $0x18] sm:$0xff] %vm246_vm3, %v483_v45 }
 0x233   : > { %v476_v47 = vpop.xlane.xlu2 %475 }
 0x234   : > { %v486_v48 = vadd.f32 %v476_v47, %v454_v53 }
 0x236   : > { %495 = vst.msk [vmem:[#allocation3 + $0x30] sm:$0xff] %vm246_vm3, %v486_v48 }
 0x237 PF: > { %p1116_p2 = scmp.ne.s32.totalorder %s1404_s15, 1 }
 0x239   : > { %508 = sbr.rel (%p1116_p2) target bundleno = 1045 (0x415), region = 48 }
 0x23e   : > { %v799_v57 = vld [vmem:[%s187_s23] sm:$0xf]  ;;  %vm814_vm4 = vcmask 1041408   ;;  %v547_v59 = vld [vmem:[#allocation3 + $0x38] sm:$0xff]  ;;  %v1425_v60 = vmov 0   ;;  %v545_v22 = vld [vmem:[#allocation3 + $0x28] sm:$0xff] }
 0x23f   : > { %v800_v26 = vpack.c.bf16 %v799_v57, %v799_v57  ;;  %1291 = vset.pattern.permute.xlu2 %v1425_v60  ;;  %1290 = vset.pattern.permute.xlu1 %v1425_v60  ;;  %1292 = vrcp.f32 %v547_v59  ;;  %v1755_v25 = vld [vmem:[#allocation3 + $0x18] sm:$0xff]  ;;  %v662_v2 = vand.u32 2147483647, %v547_v59  ;;  %v664_v3 = vand.u32 2147483648, %v547_v59  ;;  %v1757_v4 = vld [vmem:[#allocation3 + $0x30] sm:$0xff]  ;;  %v1760_v7 = vld [vmem:[#allocation3 + $0x20] sm:$0xff] }
 0x240   : > { %1289 = vset.pattern.permute.xlu0 %v1425_v60  ;;  %1294 = vrcp.f32 %v545_v22  ;;  %v632_v5 = vand.u32 2147483647, %v545_v22  ;;  %v634_v20 = vand.u32 2147483648, %v545_v22  ;;  %vm801_vm5 = vcmask 31744   ;;  %v1777_v23 = vld [vmem:[#allocation3 + $0x10] sm:$0xff]  ;;  %v1797_v56 = vld [vmem:[#allocation3 + $0x8] sm:$0xff] }
 0x241   : > { %v816_v27 = vsel %vm814_vm4, %v800_v26, 0  ;;  %1296 = vrcp.f32 %v1755_v25  ;;  %v602_v8 = vand.u32 2147483647, %v1755_v25  ;;  %v604_v12 = vand.u32 2147483648, %v1755_v25  ;;  %v540_v57 = vld [vmem:[#allocation3] sm:$0xff]  ;;  %v854_v62 = vld [vmem:[#allocation2 + $0x38] sm:$0xff] }
 0x242   : > { %825 = vmatpush.bf16.msra.mxu1 %v816_v27  ;;  %1298 = vrcp.f32 %v1757_v4  ;;  %vm658_vm6 = vweird.f32 %v547_v59  ;;  %vm1765_vm7 = vcmp.eq.f32.partialorder %v662_v2, 8.507059e+37  ;;  %vm628_vm8 = vweird.f32 %v545_v22  ;;  %v850_v55 = vld [vmem:[#allocation2 + $0x18] sm:$0xff] }
 0x243   : > { %1300 = vrcp.f32 %v1760_v7  ;;  %v665_v17 = vor.u32 1.1754944e-38, %v664_v3  ;;  %vm1772_vm9 = vcmp.eq.f32.partialorder %v632_v5, 8.507059e+37  ;;  %v635_v21 = vor.u32 1.1754944e-38, %v634_v20 }
 0x244   : > { %vm598_vm10 = vweird.f32 %v1755_v25  ;;  %vm1779_vm11 = vcmp.eq.f32.partialorder %v602_v8, 8.507059e+37  ;;  %vm643_vm12 = vweird.f32 %v1757_v4  ;;  %v605_v41 = vor.u32 1.1754944e-38, %v604_v12 }
 0x245   : > { %v1293_v14 = vpop.eup %1292  ;;  %1133 = vmatmul.msk.bf16.vlgmr.msra.gmra.mxu1 %vm801_vm5, %v1555_v6  ;;  %v647_v6 = vand.u32 2147483647, %v1757_v4  ;;  %v649_v42 = vand.u32 2147483648, %v1757_v4  ;;  %vm613_vm13 = vweird.f32 %v1760_v7  ;;  %1302 = vrcp.f32 %v1777_v23 }
 0x246   : > { %v1295_v15 = vpop.eup %1294  ;;  %v654_v24 = vmul.f32 %v1293_v14, %v547_v59  ;;  %vm659_vm14 = vweird.f32 %v1293_v14  ;;  %v617_v34 = vand.u32 2147483647, %v1760_v7  ;;  %v619_v38 = vand.u32 2147483648, %v1760_v7 }
 0x247   : > { %v1297_v35 = vpop.eup %1296  ;;  %v624_v39 = vmul.f32 %v1295_v15, %v545_v22  ;;  %vm629_vm15 = vweird.f32 %v1295_v15  ;;  %vm1800_vm1 = vmor %vm658_vm6, %vm659_vm14  ;;  %v650_v30 = vor.u32 1.1754944e-38, %v649_v42  ;;  %vm583_vm2 = vweird.f32 %v1777_v23  ;;  %v513_v22 = vld [vmem:[%s1971_s2] sm:$0xff] }
 0x248   : > { %v655_v46 = vsub.f32 1.0, %v654_v24  ;;  %v594_v51 = vmul.f32 %v1297_v35, %v1755_v25  ;;  %v1789_v28 = vpop.eup %1298  ;;  %vm599_vm0 = vweird.f32 %v1297_v35  ;;  %vm1809_vm3 = vmor %vm628_vm8, %vm629_vm15  ;;  %1304 = vrcp.f32 %v1797_v56 }
 0x249   : > { %v625_v29 = vsub.f32 1.0, %v624_v39  ;;  %v1793_v40 = vpop.eup %1300  ;;  %v639_v63 = vmul.f32 %v1789_v28, %v1757_v4  ;;  %vm644_vm4 = vweird.f32 %v1789_v28  ;;  %vm1816_vm6 = vmor %vm598_vm10, %vm599_vm0  ;;  %v587_v45 = vand.u32 2147483647, %v1777_v23 }
 0x24a   : > { %v656_v54 = vmul.f32 %v1293_v14, %v655_v46  ;;  %v595_v58 = vsub.f32 1.0, %v594_v51  ;;  %v609_v31 = vmul.f32 %v1793_v40, %v1760_v7  ;;  %vm614_vm14 = vweird.f32 %v1793_v40  ;;  %vm1832_vm8 = vmor %vm643_vm12, %vm644_vm4 }
 0x24b   : > { %v626_v1 = vmul.f32 %v1295_v15, %v625_v29  ;;  %v640_v49 = vsub.f32 1.0, %v639_v63  ;;  %v1303_v33 = vpop.eup %1302  ;;  %v589_v25 = vand.u32 2147483648, %v1777_v23  ;;  %vm648_vm10 = vcmp.eq.f32.partialorder %v647_v6, 8.507059e+37 }
 0x24c   : > { %v657_v32 = vadd.f32 %v1293_v14, %v656_v54  ;;  %v596_v43 = vmul.f32 %v1297_v35, %v595_v58  ;;  %v610_v0 = vsub.f32 1.0, %v609_v31  ;;  %v579_v48 = vmul.f32 %v1303_v33, %v1777_v23  ;;  %v853_v54 = vld [vmem:[#allocation2 + $0x30] sm:$0xff] }
 0x24d   : > { %v627_v52 = vadd.f32 %v1295_v15, %v626_v1  ;;  %v641_v37 = vmul.f32 %v1789_v28, %v640_v49  ;;  %v620_v5 = vor.u32 1.1754944e-38, %v619_v38  ;;  %1306 = vrcp.f32 %v540_v57  ;;  %v852_v1 = vld [vmem:[#allocation2 + $0x28] sm:$0xff]  ;;  %v849_v31 = vld [vmem:[#allocation2 + $0x10] sm:$0xff] }
 0x24e   : > { %v661_v36 = vsel %vm1800_vm1, %v1293_v14, %v657_v32  ;;  %v597_v16 = vadd.f32 %v1297_v35, %v596_v43  ;;  %v611_v47 = vmul.f32 %v1793_v40, %v610_v0  ;;  %v580_v4 = vsub.f32 1.0, %v579_v48  ;;  %v1305_v20 = vpop.eup %1304  ;;  %v847_v32 = vld [vmem:[#allocation2] sm:$0xff]  ;;  %v848_v43 = vld [vmem:[#allocation2 + $0x8] sm:$0xff] }
 0x24f   : > { %v666_v44 = vsel %vm1765_vm7, %v665_v17, %v661_v36  ;;  %v631_v50 = vsel %vm1809_vm3, %v1295_v15, %v627_v52  ;;  %v642_v60 = vadd.f32 %v1789_v28, %v641_v37  ;;  %vm1847_vm7 = vmor %vm613_vm13, %vm614_vm14  ;;  %vm618_vm12 = vcmp.eq.f32.partialorder %v617_v34, 8.507059e+37 }
 0x250   : > { %705 = vperm.xlu0 %1289, %v666_v44   ;;  %v636_v59 = vsel %vm1772_vm9, %v635_v21, %v631_v50  ;;  %v601_v26 = vsel %vm1816_vm6, %v1297_v35, %v597_v16  ;;  %v612_v3 = vadd.f32 %v1793_v40, %v611_v47  ;;  %vm584_vm9 = vweird.f32 %v1303_v33 }
 0x251   : > { %695 = vperm.xlu1 %1290, %v636_v59   ;;  %v606_v2 = vsel %vm1779_vm11, %v605_v41, %v601_v26  ;;  %v646_v27 = vsel %vm1832_vm8, %v1789_v28, %v642_v60  ;;  %v581_v8 = vmul.f32 %v1303_v33, %v580_v4  ;;  %vm1863_vm11 = vmor %vm583_vm2, %vm584_vm9  ;;  %vm588_vm13 = vcmp.eq.f32.partialorder %v587_v45, 8.507059e+37  ;;  %v514_v4 = vld [vmem:[%s1971_s2 + $0x8] sm:$0xff] }
 0x252   : > { %685 = vperm.xlu2 %1291, %v606_v2   ;;  %v616_v7 = vsel %vm1847_vm7, %v1793_v40, %v612_v3  ;;  %v590_v13 = vor.u32 1.1754944e-38, %v589_v25  ;;  %v564_v14 = vmul.f32 %v1305_v20, %v1797_v56  ;;  %v651_v17 = vsel %vm648_vm10, %v650_v30, %v646_v27  ;;  %v851_v30 = vld [vmem:[#allocation2 + $0x20] sm:$0xff]  ;;  %v519_v25 = vld [vmem:[%s1971_s2 + $0x30] sm:$0xff]  ;;  %v520_v27 = vld [vmem:[%s1971_s2 + $0x38] sm:$0xff] }
 0x253   : > { %v582_v18 = vadd.f32 %v1303_v33, %v581_v8  ;;  %vm568_vm15 = vweird.f32 %v1797_v56  ;;  %v574_v21 = vand.u32 2147483648, %v1797_v56  ;;  %v621_v15 = vsel %vm618_vm12, %v620_v5, %v616_v7  ;;  %v1307_v6 = vpop.eup %1306 }
 0x254   : > { %v565_v24 = vsub.f32 1.0, %v564_v14  ;;  %vm569_vm0 = vweird.f32 %v1305_v20  ;;  %v572_v23 = vand.u32 2147483647, %v1797_v56  ;;  %v549_v41 = vmul.f32 %v1307_v6, %v540_v57 }
 0x255   : > { %1134 = vmatmul.msk.bf16.gmra.mxu1 %vm801_vm5, %v1563_v9  ;;  %v586_v19 = vsel %vm1863_vm11, %v1303_v33, %v582_v18  ;;  %vm570_vm1 = vmor %vm568_vm15, %vm569_vm0  ;;  %v575_v9 = vor.u32 1.1754944e-38, %v574_v21  ;;  %v559_v46 = vand.u32 2147483648, %v540_v57  ;;  %vm553_vm3 = vweird.f32 %v540_v57  ;;  %v517_v21 = vld [vmem:[%s1971_s2 + $0x20] sm:$0xff] }
 0x256   : > { %v591_v35 = vsel %vm588_vm13, %v590_v13, %v586_v19  ;;  %v566_v39 = vmul.f32 %v1305_v20, %v565_v24  ;;  %vm573_vm2 = vcmp.eq.f32.partialorder %v572_v23, 8.507059e+37  ;;  %v550_v51 = vsub.f32 1.0, %v549_v41  ;;  %v516_v13 = vld [vmem:[%s1971_s2 + $0x18] sm:$0xff] }
 0x257   : > { %vm554_vm4 = vweird.f32 %v1307_v6  ;;  %v557_v28 = vand.u32 2147483647, %v540_v57  ;;  %v560_v40 = vor.u32 1.1754944e-38, %v559_v46  ;;  %v521_v49 = vlaneseq }
 0x258   : > { %700 = vperm.xlu0 %1289, %v651_v17   ;;  %v567_v42 = vadd.f32 %v1305_v20, %v566_v39  ;;  %v551_v38 = vmul.f32 %v1307_v6, %v550_v51  ;;  %vm555_vm6 = vmor %vm553_vm3, %vm554_vm4  ;;  %vm716_vm15 = vcmask 523264   ;;  %vm790_vm0 = vcmask 519168  }
 0x259   : > { %690 = vperm.xlu1 %1290, %v621_v15   ;;  %vm558_vm14 = vcmp.eq.f32.partialorder %v557_v28, 8.507059e+37  ;;  %v522_v52 = vshrl.u32 %v521_v49, 7  ;;  %v531_v61 = vand.u32 127, %v521_v49  ;;  %v518_v28 = vld [vmem:[%s1971_s2 + $0x28] sm:$0xff] }
 0x25a   : > { %680 = vperm.xlu2 %1291, %v591_v35   ;;  %v571_v29 = vsel %vm570_vm1, %v1305_v20, %v567_v42  ;;  %v552_v58 = vadd.f32 %v1307_v6, %v551_v38  ;;  %v515_v20 = vld [vmem:[%s1971_s2 + $0x10] sm:$0xff]  ;;  %vm993_vm1 = vcmask 130048  }
 0x25b   : > { %v576_v34 = vsel %vm573_vm2, %v575_v9, %v571_v29  ;;  %v528_v16 = vadd.s32 48, %v522_v52  ;;  %v527_v37 = vadd.s32 40, %v522_v52  ;;  %v526_v44 = vadd.s32 32, %v522_v52 }
 0x25c   : > { %v556_v63 = vsel %vm555_vm6, %v1307_v6, %v552_v58  ;;  %v525_v53 = vadd.s32 24, %v522_v52  ;;  %v524_v48 = vadd.s32 16, %v522_v52  ;;  %v523_v57 = vadd.s32 8, %v522_v52 }
 0x25d   : > { %v561_v56 = vsel %vm558_vm14, %v560_v40, %v556_v63  ;;  %vm538_vm7 = vcmp.eq.s32.totalorder %v528_v16, %v531_v61  ;;  %vm536_vm9 = vcmp.eq.s32.totalorder %v526_v44, %v531_v61  ;;  %vm532_vm13 = vcmp.eq.s32.totalorder %v522_v52, %v531_v61 }
 0x25e   : > { %vm535_vm10 = vcmp.eq.s32.totalorder %v525_v53, %v531_v61  ;;  %vm534_vm12 = vcmp.eq.s32.totalorder %v524_v48, %v531_v61  ;;  %vm533_vm11 = vcmp.eq.s32.totalorder %v523_v57, %v531_v61 }
 0x260   : > { %675 = vperm.xlu0 %1289, %v576_v34  }
 0x261   : > { %670 = vperm.xlu1 %1290, %v561_v56  }
 0x262   : > { %887 = vperm.xlu2 %1291, %v853_v54  }
 0x265   : > { %1135 = vmatmul.msk.bf16.gmra.mxu1 %vm801_vm5, %v1565_v10  ;;  %v529_v10 = vadd.s32 56, %v522_v52 }
 0x267   : > { %vm539_vm8 = vcmp.eq.s32.totalorder %v529_v10, %v531_v61 }
 0x268   : > { %892 = vperm.xlu0 %1289, %v854_v62  }
 0x269   : > { %877 = vperm.xlu1 %1290, %v851_v30  }
 0x26a   : > { %882 = vperm.xlu2 %1291, %v852_v1  }
 0x270   : > { %867 = vperm.xlu0 %1289, %v849_v31  }
 0x271   : > { %872 = vperm.xlu1 %1290, %v850_v55  }
 0x272   : > { %857 = vperm.xlu2 %1291, %v847_v32  }
 0x275   : > { %1136 = vmatmul.msk.bf16.gmra.mxu1 %vm801_vm5, %v1567_v11  ;;  %vm537_vm5 = vcmp.eq.s32.totalorder %v527_v37, %v531_v61 }
 0x278   : > { %862 = vperm.xlu0 %1289, %v848_v43  }
 0x2ac   : > { %v686_v45 = vpop.permute.xlu2 %685 }
 0x2b4   : > { %v681_v59 = vpop.permute.xlu2 %680 }
 0x2bc   : > { %v888_v12 = vpop.permute.xlu2 %887 }
 0x2c2   : > { %v1879_v0 = vpop.f32.mrf.mxu1  ;;  %v706_v33 = vpop.permute.xlu0 %705 }
 0x2c3   : > { %v696_v36 = vpop.permute.xlu1 %695  ;;  %1117 = vmatpush.msk.msra.mxu0 %vm539_vm8, %v706_v33  ;;  %1167 = vmatpush.msk.msra.mxu3 %vm539_vm8, %v706_v33 }
 0x2c4   : > { %v883_v15 = vpop.permute.xlu2 %882 }
 0x2ca   : > { %v1881_v50 = vpop.f32.mrf.mxu1  ;;  %v701_v11 = vpop.permute.xlu0 %700 }
 0x2cb   : > { %1118 = vmatpush.msk.msra.mxu0 %vm538_vm7, %v701_v11  ;;  %1168 = vmatpush.msk.msra.mxu3 %vm538_vm7, %v701_v11  ;;  %v691_v47 = vpop.permute.xlu1 %690 }
 0x2cc   : > { %v858_v38 = vpop.permute.xlu2 %857 }
 0x2cd   : > { %1119 = vmatpush.msk.msra.mxu0 %vm537_vm5, %v696_v36  ;;  %1169 = vmatpush.msk.msra.mxu3 %vm537_vm5, %v696_v36  ;;  %v895_v63 = vsub.f32 %v1879_v0, %v858_v38 }
 0x2cf   : > { %1120 = vmatpush.msk.msra.mxu0 %vm536_vm9, %v691_v47  ;;  %1170 = vmatpush.msk.msra.mxu3 %vm536_vm9, %v691_v47  ;;  %v903_v32 = vmul.f32 1.442695, %v895_v63 }
 0x2d1   : > { %1121 = vmatpush.msk.msra.mxu0 %vm535_vm10, %v686_v45  ;;  %1171 = vmatpush.msk.msra.mxu3 %vm535_vm10, %v686_v45 }
 0x2d2   : > { %v832_v26 = vpop.f32.mrf.mxu1  ;;  %v676_v60 = vpop.permute.xlu0 %675 }
 0x2d3   : > { %1122 = vmatpush.msk.msra.mxu0 %vm534_vm12, %v681_v59  ;;  %1172 = vmatpush.msk.msra.mxu3 %vm534_vm12, %v681_v59  ;;  %v671_v2 = vpop.permute.xlu1 %670 }
 0x2d5   : > { %1123 = vmatpush.msk.msra.mxu0 %vm533_vm11, %v676_v60  ;;  %1173 = vmatpush.msk.msra.mxu3 %vm533_vm11, %v676_v60 }
 0x2d7   : > { %1124 = vmatpush.msk.msra.mxu0 %vm532_vm13, %v671_v2  ;;  %1174 = vmatpush.msk.msra.mxu3 %vm532_vm13, %v671_v2 }
 0x2d8   : > { %1125 = vmatmul.msk.f32.vlgmr.msra.gmra.mxu0 %vm716_vm15, %v513_v22  ;;  %1131 = vmatmul.msk.f32.vlgmr.msra.gmra.mxu3 %vm716_vm15, %v519_v25 }
 0x2da   : > { %v834_v3 = vpop.f32.mrf.mxu1  ;;  %v893_v7 = vpop.permute.xlu0 %892 }
 0x2db   : > { %v878_v14 = vpop.permute.xlu1 %877 }
 0x2e0   : > { %1126 = vmatmul.msk.f32.gmra.mxu0 %vm716_vm15, %v514_v4  ;;  %1132 = vmatmul.msk.f32.gmra.mxu3 %vm716_vm15, %v520_v27 }
 0x2e2   : > { %v837_v5 = vpop.f32.mrf.mxu1  ;;  %v868_v18 = vpop.permute.xlu0 %867 }
 0x2e3   : > { %v873_v19 = vpop.permute.xlu1 %872  ;;  %v899_v39 = vsub.f32 %v837_v5, %v878_v14  ;;  %v897_v41 = vsub.f32 %v832_v26, %v868_v18 }
 0x2e4   : > { %v898_v42 = vsub.f32 %v834_v3, %v873_v19 }
 0x2e5   : > { %v911_v34 = vmul.f32 1.442695, %v899_v39  ;;  %v907_v40 = vmul.f32 1.442695, %v897_v41 }
 0x2e6   : > { %v909_v54 = vmul.f32 1.442695, %v898_v42 }
 0x2e8   : > { %1127 = vmatmul.msk.f32.gmra.mxu0 %vm716_vm15, %v515_v20 }
 0x2ea   : > { %v839_v8 = vpop.f32.mrf.mxu1  ;;  %v863_v29 = vpop.permute.xlu0 %862 }
 0x2eb   : > { %v900_v23 = vsub.f32 %v839_v8, %v883_v15  ;;  %v896_v58 = vsub.f32 %v1881_v50, %v863_v29 }
 0x2ed   : > { %v913_v46 = vmul.f32 1.442695, %v900_v23  ;;  %v905_v1 = vmul.f32 1.442695, %v896_v58 }
 0x2f0   : > { %1128 = vmatmul.msk.f32.gmra.mxu0 %vm716_vm15, %v516_v13 }
 0x2f2   : > { %v842_v17 = vpop.f32.mrf.mxu1 }
 0x2f3   : > { %v901_v24 = vsub.f32 %v842_v17, %v888_v12 }
 0x2f5   : > { %v915_v6 = vmul.f32 1.442695, %v901_v24 }
 0x2f7   : > { %1308 = vpow2.f32 %v915_v6 }
 0x2f8   : > { %1129 = vmatmul.msk.f32.gmra.mxu0 %vm716_vm15, %v517_v21 }
 0x2fa   : > { %v844_v35 = vpop.f32.mrf.mxu1 }
 0x2fb   : > { %v902_v9 = vsub.f32 %v844_v35, %v893_v7 }
 0x2fd   : > { %v917_v51 = vmul.f32 1.442695, %v902_v9  ;;  %v1309_v56 = vpop.eup %1308 }
 0x2ff   : > { %1310 = vpow2.f32 %v917_v51 }
 0x300   : > { %1130 = vmatmul.msk.f32.gmra.mxu0 %vm716_vm15, %v518_v28  ;;  %1312 = vpow2.f32 %v913_v46 }
 0x301   : > { %1314 = vpow2.f32 %v911_v34 }
 0x302   : > { %1316 = vpow2.f32 %v907_v40 }
 0x303   : > { %1318 = vpow2.f32 %v909_v54 }
 0x304   : > { %1320 = vpow2.f32 %v905_v1 }
 0x305   : > { %v1311_v62 = vpop.eup %1310  ;;  %1322 = vpow2.f32 %v903_v32 }
 0x306   : > { %v930_v30 = vpack.c.bf16 %v1311_v62, %v1309_v56  ;;  %v1313_v31 = vpop.eup %1312 }
 0x307   : > { %v1315_v55 = vpop.eup %1314 }
 0x308   : > { %968 = vmatpush.bf16.msra.mxu2 %v930_v30  ;;  %1175 = vmatpush.bf16.msrb.mxu3 %v930_v30  ;;  %v1317_v43 = vpop.eup %1316  ;;  %v929_v49 = vpack.c.bf16 %v1313_v31, %v1315_v55 }
 0x309   : > { %v1319_v52 = vpop.eup %1318 }
 0x30a   : > { %v928_v10 = vpack.c.bf16 %v1319_v52, %v1317_v43  ;;  %v1321_v61 = vpop.eup %1320 }
 0x30b   : > { %v1323_v0 = vpop.eup %1322 }
 0x30c   : > { %969 = vmatpush.bf16.msra.mxu2 %v929_v49  ;;  %1176 = vmatpush.bf16.msrb.mxu3 %v929_v49  ;;  %v927_v33 = vpack.c.bf16 %v1321_v61, %v1323_v0 }
 0x310   : > { %970 = vmatpush.bf16.msra.mxu2 %v928_v10  ;;  %1177 = vmatpush.bf16.msrb.mxu3 %v928_v10 }
 0x314   : > { %971 = vmatpush.bf16.msra.mxu2 %v927_v33  ;;  %1178 = vmatpush.bf16.msrb.mxu3 %v927_v33 }
 0x355   : > { %v758_v36 = vpop.f32.mrf.mxu0 }
 0x356   : > { %v782_v16 = vpack.c.bf16 %v758_v36, %v758_v36 }
 0x358   : > { %791 = vst.msk [vmem:[#allocation4] sm:$0xf] %vm790_vm0, %v782_v16 }
 0x35b   : > { %v776_v37 = vpop.f32.mrf.mxu3 }
 0x35c   : > { %v788_v45 = vpack.c.bf16 %v776_v37, %v776_v37 }
 0x35d   : > { %v761_v44 = vpop.f32.mrf.mxu0 }
 0x35e   : > { %v783_v50 = vpack.c.bf16 %v761_v44, %v761_v44  ;;  %797 = vst.msk [vmem:[#allocation4 + $0x18] sm:$0xf] %vm790_vm0, %v788_v45 }
 0x360   : > { %792 = vst.msk [vmem:[#allocation4 + $0x4] sm:$0xf] %vm790_vm0, %v783_v50 }
 0x363   : > { %v779_v11 = vpop.f32.mrf.mxu3 }
 0x364   : > { %v789_v53 = vpack.c.bf16 %v779_v11, %v779_v11 }
 0x365   : > { %v764_v47 = vpop.f32.mrf.mxu0 }
 0x366   : > { %v784_v48 = vpack.c.bf16 %v764_v47, %v764_v47  ;;  %798 = vst.msk [vmem:[#allocation4 + $0x1c] sm:$0xf] %vm790_vm0, %v789_v53 }
 0x367   : > { %v1160_v57 = vld [vmem:[#allocation4] sm:$0xff] }
 0x368   : > { %793 = vst.msk [vmem:[#allocation4 + $0x8] sm:$0xf] %vm790_vm0, %v784_v48  ;;  %1153 = vmatmul.msk.bf16.vlgmr.msra.gmra.mxu2 %vm716_vm15, %v1160_v57 }
 0x36d   : > { %v767_v59 = vpop.f32.mrf.mxu0  ;;  %v1163_v26 = vld [vmem:[#allocation4 + $0x18] sm:$0xff] }
 0x36e   : > { %v785_v60 = vpack.c.bf16 %v767_v59, %v767_v59  ;;  %1156 = vmatmul.msk.bf16.vlgmr.msrb.gmra.mxu3 %vm716_vm15, %v1163_v26 }
 0x370   : > { %794 = vst.msk [vmem:[#allocation4 + $0xc] sm:$0xf] %vm790_vm0, %v785_v60 }
 0x375   : > { %v770_v22 = vpop.f32.mrf.mxu0 }
 0x376   : > { %v786_v25 = vpack.c.bf16 %v770_v22, %v770_v22 }
 0x377   : > { %v1161_v2 = vld [vmem:[#allocation4 + $0x8] sm:$0xff] }
 0x378   : > { %795 = vst.msk [vmem:[#allocation4 + $0x10] sm:$0xf] %vm790_vm0, %v786_v25  ;;  %1154 = vmatmul.msk.bf16.gmra.mxu2 %vm716_vm15, %v1161_v2 }
 0x37d   : > { %v773_v3 = vpop.f32.mrf.mxu0 }
 0x37e   : > { %v787_v4 = vpack.c.bf16 %v773_v3, %v773_v3 }
 0x380   : > { %796 = vst.msk [vmem:[#allocation4 + $0x14] sm:$0xf] %vm790_vm0, %v787_v4 }
 0x387   : > { %v1162_v27 = vld [vmem:[#allocation4 + $0x10] sm:$0xff] }
 0x388   : > { %1155 = vmatmul.msk.bf16.gmra.mxu2 %vm716_vm15, %v1162_v27 }
 0x3eb   : > { %v973_v5 = vpop.f32.mrf.mxu2 }
 0x3ec   : > { %994 = vst.msk [vmem:[%s1535_s28] sm:$0xff] %vm993_vm1, %v973_v5 }
 0x3f1   : > { %v988_v20 = vpop.f32.mrf.mxu3 }
 0x3f2   : > { %1000 = vst.msk [vmem:[%s1535_s28 + $0x30] sm:$0xff] %vm993_vm1, %v988_v20 }
 0x3f3   : > { %v975_v7 = vpop.f32.mrf.mxu2 }
 0x3f4   : > { %995 = vst.msk [vmem:[%s1535_s28 + $0x8] sm:$0xff] %vm993_vm1, %v975_v7 }
 0x3f9   : > { %v990_v8 = vpop.f32.mrf.mxu3 }
 0x3fa   : > { %1001 = vst.msk [vmem:[%s1535_s28 + $0x38] sm:$0xff] %vm993_vm1, %v990_v8 }
 0x3fb   : > { %v978_v12 = vpop.f32.mrf.mxu2 }
 0x3fc   : > { %996 = vst.msk [vmem:[%s1535_s28 + $0x10] sm:$0xff] %vm993_vm1, %v978_v12 }
 0x403   : > { %v980_v13 = vpop.f32.mrf.mxu2 }
 0x404   : > { %997 = vst.msk [vmem:[%s1535_s28 + $0x18] sm:$0xff] %vm993_vm1, %v980_v13 }
 0x40b   : > { %v983_v14 = vpop.f32.mrf.mxu2 }
 0x40c   : > { %998 = vst.msk [vmem:[%s1535_s28 + $0x20] sm:$0xff] %vm993_vm1, %v983_v14 }
 0x413   : > { %v985_v17 = vpop.f32.mrf.mxu2 }
 0x414   : > { %999 = vst.msk [vmem:[%s1535_s28 + $0x28] sm:$0xff] %vm993_vm1, %v985_v17 }
 0x415 PF: > { %s16_s19 = sadd.s32 1, %s1420_s19   ;;  %s1993_s12 = smov %s1396_s13 }
 0x416   : > { %p13_p3 = scmp.ge.s32.totalorder %s16_s19, 6   ;;  %s1994_s13 = smov %s1400_s14 }
 0x417   : > { %s1995_s14 = smov %s1511_s30  ;;  %s1996_s15 = smov %s1412_s17 }
 0x418   : > { %s1997_s16 = smov %s1416_s18  ;;  %s1998_s17 = smov %s2001_s21 }
 0x419   : > { %s1999_s18 = smov %s2005_s22  ;;  %15 = sbr.rel (!%p13_p3) target bundleno = 5 (0x5), region = 88 }
 0x41e   :  { %1032 = vsyncpa [#allocation6], 1 }
 0x41f   :  { %1034 = vsyncpa [#allocation6 + $0x1], 1 }

</bundles_post_ra>
